<compile_context>
chip_gen: v7x
topology: tpu7x:2x2x1
jax: 0.10.0
libtpu: 0.0.40
codegen_flags: <defaults>
</compile_context>

<pallas_src>
import functools

import jax
import jax.numpy as jnp
from jax.experimental import pallas as pl
from jax.experimental.pallas import tpu as pltpu

LEAKY_SLOPE = 0.01
HIDDEN = (24, 24, 24)

# Batch-tile sizing (lane dimension).  Per-grid-step VMEM footprint is only
# ~(2*D_pad + 1) * 4 bytes * TILE_B (x2 for double buffering) -- a few hundred
# KiB even at TILE_B = 16384 -- so we default to a large tile and only shrink
# to keep >= 2 grid steps (v7x megacore) and < ~10% batch-padding waste.
_MAX_TILE_B = 4096
_MIN_GRID_STEPS = 2


def _round_up(x, m):
    return -(-x // m) * m


def _choose_tile(batch):
    """Pick (tile_b, b_pad): tile_b multiple of 128, >=2 grid steps if possible."""
    b128 = _round_up(batch, 128)
    n_cols = b128 // 128
    if n_cols <= 1:
        return 128, 128
    target_steps = max(_MIN_GRID_STEPS, -(-b128 // _MAX_TILE_B))
    tile_cols = -(-n_cols // target_steps)
    tile_b = tile_cols * 128
    b_pad = _round_up(b128, tile_b)
    return tile_b, b_pad


# ----------------------------------------------------------------------------
# Kernel
# ----------------------------------------------------------------------------
def affine_half_kernel(zt_ref, *refs, d_pad):
    """refs = (w0, b0, w1, b1, ..., wL, bL, xt_ref, ld_ref)."""
    xt_ref, ld_ref = refs[-2], refs[-1]
    params = refs[:-2]
    n_layers = len(params) // 2

    zt = zt_ref[...]                                   # (D_pad, TILE_B), feature-major
    h = zt
    for i in range(n_layers):
        w = params[2 * i][...]
        b = params[2 * i + 1][...]
        h = jnp.dot(w, h, preferred_element_type=jnp.float32) + b
        if i < n_layers - 1:
            h = jnp.maximum(h, LEAKY_SLOPE * h)        # LeakyReLU: 1 mul + 1 max

    st = h                                             # (2*D_pad, TILE_B)
    s_full = st[:d_pad, :]                             # tile-aligned (d_pad % 8 == 0)
    t_full = st[d_pad:, :]

    # Passthrough rows carry s == t == 0 (zero-padded W3/b3): exp(0)*z + 0 == z.
    xt_ref[...] = (jnp.exp(s_full) * zt + t_full).astype(xt_ref.dtype)
    ld_ref[...] = jnp.sum(s_full, axis=0, keepdims=True).astype(ld_ref.dtype)


# ----------------------------------------------------------------------------
# Parameter construction / fusion
# ----------------------------------------------------------------------------
def init_mlp_params(key, sizes):
    """PyTorch nn.Linear-style params: weight (out, in), bias (out,)."""
    ws, bs = [], []
    for s_in, s_out in zip(sizes[:-1], sizes[1:]):
        key, kw, kb = jax.random.split(key, 3)
        bound = 1.0 / jnp.sqrt(jnp.float32(s_in))
        ws.append(jax.random.uniform(kw, (s_out, s_in), jnp.float32, -bound, bound))
        bs.append(jax.random.uniform(kb, (s_out,), jnp.float32, -bound, bound))
    return ws, bs


def _block_diag(a, b):
    m, n = a.shape
    p, q = b.shape
    out = jnp.zeros((m + p, n + q), jnp.float32)
    out = out.at[:m, :n].set(a)
    out = out.at[m:, n:].set(b)
    return out


def _fuse_nets_padded(s_params, t_params, *, d2, parity, d_pad):
    """Fuse s_net/t_net into one block-diagonal MLP; pad first/last layers so
    the kernel consumes the full feature vector and emits full-D s/t rows."""
    sw, sb = s_params
    tw, tb = t_params
    n_layers = len(sw)
    assert n_layers >= 2

    cond_lo = d2 if parity else 0     # conditioner half (z0) feature positions
    trans_lo = 0 if parity else d2    # transformed half (z1) feature positions

    ws, bs = [], []

    # Layer 0: shared conditioner input; zero columns at passthrough features.
    o_s, o_t = sw[0].shape[0], tw[0].shape[0]
    w0 = jnp.zeros((o_s + o_t, d_pad), jnp.float32)
    w0 = w0.at[:o_s, cond_lo:cond_lo + d2].set(sw[0])
    w0 = w0.at[o_s:, cond_lo:cond_lo + d2].set(tw[0])
    b0 = jnp.concatenate([sb[0], tb[0]])[:, None]
    ws.append(w0)
    bs.append(b0)

    # Hidden layers: block-diagonal (independent s / t branches).
    for i in range(1, n_layers - 1):
        ws.append(_block_diag(sw[i], tw[i]))
        bs.append(jnp.concatenate([sb[i], tb[i]])[:, None])

    # Last layer: scatter s into rows [0, d_pad), t into rows [d_pad, 2*d_pad)
    # at the transformed feature positions; zeros elsewhere (passthrough rows).
    h_s, h_t = sw[-1].shape[1], tw[-1].shape[1]
    wl = jnp.zeros((2 * d_pad, h_s + h_t), jnp.float32)
    wl = wl.at[trans_lo:trans_lo + d2, :h_s].set(sw[-1])
    wl = wl.at[d_pad + trans_lo:d_pad + trans_lo + d2, h_s:].set(tw[-1])
    bl = jnp.zeros((2 * d_pad, 1), jnp.float32)
    bl = bl.at[trans_lo:trans_lo + d2, 0].set(sb[-1])
    bl = bl.at[d_pad + trans_lo:d_pad + trans_lo + d2, 0].set(tb[-1])
    ws.append(wl)
    bs.append(bl)
    return ws, bs


# ----------------------------------------------------------------------------
# Wrappers
# ----------------------------------------------------------------------------
@functools.partial(jax.jit, static_argnames=("parity",))
def affine_half_flow_forward_fm(z_fm, s_params, t_params, *, parity: bool):
    """Feature-major forward: z_fm (D, B) -> (x_fm (D, B), log_det (B,)).

    Primary API: keep the whole flow stack in (D, B) layout and call this
    directly so no per-layer HBM transposes are needed.
    """
    D, B = z_fm.shape
    d2 = D // 2
    d_pad = max(8, _round_up(D, 8))

    ws, bs = _fuse_nets_padded(s_params, t_params, d2=d2, parity=parity, d_pad=d_pad)
    flat_params = [p for wb in zip(ws, bs) for p in wb]

    tile_b, b_pad = _choose_tile(B)
    zt = z_fm
    if (d_pad, b_pad) != (D, B):
        zt = jnp.pad(zt, ((0, d_pad - D), (0, b_pad - B)))

    grid = (b_pad // tile_b,)
    batch_spec = pl.BlockSpec((d_pad, tile_b), lambda i: (0, i))
    ld_spec = pl.BlockSpec((1, tile_b), lambda i: (0, i))
    # Constant index maps -> fused weights stay resident in VMEM across grid.
    param_specs = [pl.BlockSpec(p.shape, lambda i: (0, 0)) for p in flat_params]

    flops = 2 * b_pad * sum(int(w.shape[0]) * int(w.shape[1]) for w in ws) + 8 * b_pad * d_pad
    bytes_accessed = 4 * (2 * d_pad * b_pad + b_pad + sum(int(p.size) for p in flat_params))
    cost = pl.CostEstimate(flops=flops, transcendentals=b_pad * d_pad,
                           bytes_accessed=bytes_accessed)

    xt, ld = pl.pallas_call(
        functools.partial(affine_half_kernel, d_pad=d_pad),
        out_shape=(
            jax.ShapeDtypeStruct((d_pad, b_pad), z_fm.dtype),
            jax.ShapeDtypeStruct((1, b_pad), jnp.float32),
        ),
        grid=grid,
        in_specs=[batch_spec, *param_specs],
        out_specs=(batch_spec, ld_spec),
        compiler_params=pltpu.CompilerParams(
            dimension_semantics=("parallel",),        # shard batch tiles across TCs
        ),
        cost_estimate=cost,
    )(zt, *flat_params)

    x_fm = xt[:D, :B]
    log_det = ld[0, :B]
    return x_fm, log_det


@functools.partial(jax.jit, static_argnames=("parity",))
def affine_half_flow_forward(z, s_params, t_params, *, parity: bool):
    """Batch-major module interface: z (B, D) -> (x (B, D), log_det (B,)).

    Transposes exactly once at entry/exit; prefer the feature-major API for
    stacks of coupling layers to avoid the HBM transpose round trips.
    """
    x_fm, log_det = affine_half_flow_forward_fm(z.T, s_params, t_params, parity=parity)
    return x_fm.T, log_det


# ----------------------------------------------------------------------------
# Pure-JAX reference (batch-major, un-fused) for correctness checking.
# ----------------------------------------------------------------------------
def _reference_forward(z, s_params, t_params, *, parity: bool):
    B, D = z.shape
    d2 = D // 2
    z0, z1 = z[:, :d2], z[:, d2:]
    if parity:
        z0, z1 = z1, z0

    def mlp(x, ws, bs):
        h = x
        for i, (w, b) in enumerate(zip(ws, bs)):
            h = h @ w.T + b
            if i < len(ws) - 1:
                h = jnp.where(h > 0, h, LEAKY_SLOPE * h)
        return h

    s = mlp(z0, s_params[0], s_params[1])
    t = mlp(z0, t_params[0], t_params[1])
    x0, x1 = z0, jnp.exp(s) * z1 + t
    if parity:
        x0, x1 = x1, x0
    return jnp.concatenate([x0, x1], axis=1), jnp.sum(s, axis=1)


# TODO(synk): inverse pass (x1 = (z1 - t) / exp(s), log_det = -sum(s)) not implemented; forward only.

if __name__ == "__main__":
    B, DIM = 512, 8   # grid = (2,) -> both TensorCores active on v7x

    key = jax.random.PRNGKey(0)
    kz, ks, kt = jax.random.split(key, 3)

    z = jax.random.normal(kz, (B, DIM), jnp.float32)

    layer_sizes = (DIM // 2, *HIDDEN, DIM // 2)
    s_params = init_mlp_params(ks, layer_sizes)
    t_params = init_mlp_params(kt, layer_sizes)

    z_fm = z.T   # single transpose at flow-stack entry (feature-major path)

    for parity in (False, True):
        # Primary, transpose-free feature-major path.
        x_fm, ld_fm = affine_half_flow_forward_fm(z_fm, s_params, t_params, parity=parity)
        # Module-semantics (B, D) wrapper.
        x_bm, ld_bm = affine_half_flow_forward(z, s_params, t_params, parity=parity)
        jax.block_until_ready((x_fm, ld_fm, x_bm, ld_bm))

        x_ref, ld_ref = _reference_forward(z, s_params, t_params, parity=parity)
        assert jnp.allclose(x_fm.T, x_ref, atol=1e-5, rtol=1e-5), f"x (fm) mismatch (parity={parity})"
        assert jnp.allclose(ld_fm, ld_ref, atol=1e-5, rtol=1e-5), f"log_det (fm) mismatch (parity={parity})"
        assert jnp.allclose(x_bm, x_ref, atol=1e-5, rtol=1e-5), f"x (bm) mismatch (parity={parity})"
        assert jnp.allclose(ld_bm, ld_ref, atol=1e-5, rtol=1e-5), f"log_det (bm) mismatch (parity={parity})"

    print("KERNEL_OK")
</pallas_src>

<mosaic_0001>
module attributes {stable_mosaic.version = 11 : i64} {
  func.func @affine_half_kernel(%arg0: i32, %arg1: memref<8x256xf32, #tpu.memory_space<vmem>>, %arg2: memref<48x8xf32, #tpu.memory_space<vmem>>, %arg3: memref<48x1xf32, #tpu.memory_space<vmem>>, %arg4: memref<48x48xf32, #tpu.memory_space<vmem>>, %arg5: memref<48x1xf32, #tpu.memory_space<vmem>>, %arg6: memref<48x48xf32, #tpu.memory_space<vmem>>, %arg7: memref<48x1xf32, #tpu.memory_space<vmem>>, %arg8: memref<16x48xf32, #tpu.memory_space<vmem>>, %arg9: memref<16x1xf32, #tpu.memory_space<vmem>>, %arg10: memref<8x256xf32, #tpu.memory_space<vmem>>, %arg11: memref<1x256xf32, #tpu.memory_space<vmem>>) attributes {dimension_semantics = [#tpu.dimension_semantics<parallel>], iteration_bounds = array<i64: 2>, scalar_prefetch = 0 : i64, scratch_operands = 0 : i64, tpu.core_type = #tpu.core_type<tc>, window_params = [{transform_indices = @transform_0, window_bounds = array<i64: 8, 256>}, {pipeline_mode = #tpu.pipeline_mode<synchronous>, transform_indices = @transform_1, window_bounds = array<i64: 48, 8>}, {pipeline_mode = #tpu.pipeline_mode<synchronous>, transform_indices = @transform_2, window_bounds = array<i64: 48, 1>}, {pipeline_mode = #tpu.pipeline_mode<synchronous>, transform_indices = @transform_3, window_bounds = array<i64: 48, 48>}, {pipeline_mode = #tpu.pipeline_mode<synchronous>, transform_indices = @transform_4, window_bounds = array<i64: 48, 1>}, {pipeline_mode = #tpu.pipeline_mode<synchronous>, transform_indices = @transform_5, window_bounds = array<i64: 48, 48>}, {pipeline_mode = #tpu.pipeline_mode<synchronous>, transform_indices = @transform_6, window_bounds = array<i64: 48, 1>}, {pipeline_mode = #tpu.pipeline_mode<synchronous>, transform_indices = @transform_7, window_bounds = array<i64: 16, 48>}, {pipeline_mode = #tpu.pipeline_mode<synchronous>, transform_indices = @transform_8, window_bounds = array<i64: 16, 1>}, {transform_indices = @transform_9, window_bounds = array<i64: 8, 256>}, {transform_indices = @transform_10, window_bounds = array<i64: 1, 256>}]} {
    %c0 = arith.constant 0 : index
    %c0_0 = arith.constant 0 : index
    %0 = vector.load %arg1[%c0, %c0_0] : memref<8x256xf32, #tpu.memory_space<vmem>>, vector<8x256xf32>
    %c0_1 = arith.constant 0 : index
    %c0_2 = arith.constant 0 : index
    %1 = vector.load %arg2[%c0_1, %c0_2] : memref<48x8xf32, #tpu.memory_space<vmem>>, vector<48x8xf32>
    %c0_3 = arith.constant 0 : index
    %c0_4 = arith.constant 0 : index
    %2 = vector.load %arg3[%c0_3, %c0_4] : memref<48x1xf32, #tpu.memory_space<vmem>>, vector<48x1xf32>
    %cst = arith.constant dense<0.000000e+00> : vector<48x256xf32>
    %3 = tpu.matmul %1, %0, %cst {dimension_numbers = #tpu.dot_dimension_numbers<[1], [0], [0], [1], [0, 0, 1, 1], [], []>} : vector<48x8xf32>, vector<8x256xf32>, vector<48x256xf32> -> vector<48x256xf32>
    %4 = vector.broadcast %2 : vector<48x1xf32> to vector<48x256xf32>
    %5 = arith.addf %3, %4 : vector<48x256xf32>
    %cst_5 = arith.constant 0.00999999977 : f32
    %6 = vector.broadcast %cst_5 : f32 to vector<48x256xf32>
    %7 = arith.mulf %6, %5 : vector<48x256xf32>
    %8 = arith.maximumf %5, %7 : vector<48x256xf32>
    %c0_6 = arith.constant 0 : index
    %c0_7 = arith.constant 0 : index
    %9 = vector.load %arg4[%c0_6, %c0_7] : memref<48x48xf32, #tpu.memory_space<vmem>>, vector<48x48xf32>
    %c0_8 = arith.constant 0 : index
    %c0_9 = arith.constant 0 : index
    %10 = vector.load %arg5[%c0_8, %c0_9] : memref<48x1xf32, #tpu.memory_space<vmem>>, vector<48x1xf32>
    %cst_10 = arith.constant dense<0.000000e+00> : vector<48x256xf32>
    %11 = tpu.matmul %9, %8, %cst_10 {dimension_numbers = #tpu.dot_dimension_numbers<[1], [0], [0], [1], [0, 0, 1, 1], [], []>} : vector<48x48xf32>, vector<48x256xf32>, vector<48x256xf32> -> vector<48x256xf32>
    %12 = vector.broadcast %10 : vector<48x1xf32> to vector<48x256xf32>
    %13 = arith.addf %11, %12 : vector<48x256xf32>
    %cst_11 = arith.constant 0.00999999977 : f32
    %14 = vector.broadcast %cst_11 : f32 to vector<48x256xf32>
    %15 = arith.mulf %14, %13 : vector<48x256xf32>
    %16 = arith.maximumf %13, %15 : vector<48x256xf32>
    %c0_12 = arith.constant 0 : index
    %c0_13 = arith.constant 0 : index
    %17 = vector.load %arg6[%c0_12, %c0_13] : memref<48x48xf32, #tpu.memory_space<vmem>>, vector<48x48xf32>
    %c0_14 = arith.constant 0 : index
    %c0_15 = arith.constant 0 : index
    %18 = vector.load %arg7[%c0_14, %c0_15] : memref<48x1xf32, #tpu.memory_space<vmem>>, vector<48x1xf32>
    %cst_16 = arith.constant dense<0.000000e+00> : vector<48x256xf32>
    %19 = tpu.matmul %17, %16, %cst_16 {dimension_numbers = #tpu.dot_dimension_numbers<[1], [0], [0], [1], [0, 0, 1, 1], [], []>} : vector<48x48xf32>, vector<48x256xf32>, vector<48x256xf32> -> vector<48x256xf32>
    %20 = vector.broadcast %18 : vector<48x1xf32> to vector<48x256xf32>
    %21 = arith.addf %19, %20 : vector<48x256xf32>
    %cst_17 = arith.constant 0.00999999977 : f32
    %22 = vector.broadcast %cst_17 : f32 to vector<48x256xf32>
    %23 = arith.mulf %22, %21 : vector<48x256xf32>
    %24 = arith.maximumf %21, %23 : vector<48x256xf32>
    %c0_18 = arith.constant 0 : index
    %c0_19 = arith.constant 0 : index
    %25 = vector.load %arg8[%c0_18, %c0_19] : memref<16x48xf32, #tpu.memory_space<vmem>>, vector<16x48xf32>
    %c0_20 = arith.constant 0 : index
    %c0_21 = arith.constant 0 : index
    %26 = vector.load %arg9[%c0_20, %c0_21] : memref<16x1xf32, #tpu.memory_space<vmem>>, vector<16x1xf32>
    %cst_22 = arith.constant dense<0.000000e+00> : vector<16x256xf32>
    %27 = tpu.matmul %25, %24, %cst_22 {dimension_numbers = #tpu.dot_dimension_numbers<[1], [0], [0], [1], [0, 0, 1, 1], [], []>} : vector<16x48xf32>, vector<48x256xf32>, vector<16x256xf32> -> vector<16x256xf32>
    %28 = vector.broadcast %26 : vector<16x1xf32> to vector<16x256xf32>
    %29 = arith.addf %27, %28 : vector<16x256xf32>
    %30 = vector.extract_strided_slice %29 {offsets = [0, 0], sizes = [8, 256], strides = [1, 1]} : vector<16x256xf32> to vector<8x256xf32>
    %31 = vector.extract_strided_slice %29 {offsets = [8, 0], sizes = [8, 256], strides = [1, 1]} : vector<16x256xf32> to vector<8x256xf32>
    %32 = math.exp %30 : vector<8x256xf32>
    %33 = arith.mulf %32, %0 : vector<8x256xf32>
    %34 = arith.addf %33, %31 : vector<8x256xf32>
    %c0_23 = arith.constant 0 : index
    %c0_24 = arith.constant 0 : index
    %35 = vector.load %arg10[%c0_23, %c0_24] : memref<8x256xf32, #tpu.memory_space<vmem>>, vector<8x256xf32>
    tpu.vector_store %arg10[%c0_23, %c0_24], %34 {strides = array<i32>} : memref<8x256xf32, #tpu.memory_space<vmem>>, vector<8x256xf32>,
    %cst_25 = arith.constant dense<0.000000e+00> : vector<256xf32>
    %36 = vector.multi_reduction <add>, %30, %cst_25 [0] : vector<8x256xf32> to vector<256xf32>
    %37 = vector.shape_cast %36 : vector<256xf32> to vector<1x256xf32>
    %c0_26 = arith.constant 0 : index
    %c0_27 = arith.constant 0 : index
    %38 = vector.load %arg11[%c0_26, %c0_27] : memref<1x256xf32, #tpu.memory_space<vmem>>, vector<1x256xf32>
    tpu.vector_store %arg11[%c0_26, %c0_27], %37 {strides = array<i32>} : memref<1x256xf32, #tpu.memory_space<vmem>>, vector<1x256xf32>,
    return
  }
  func.func @transform_0(%arg0: i32) -> (i32, i32) {
    %c0_i32 = arith.constant 0 : i32
    %c0_i32_0 = arith.constant 0 : i32
    return %c0_i32, %arg0 : i32, i32
  }
  func.func @transform_1(%arg0: i32) -> (i32, i32) {
    %c0_i32 = arith.constant 0 : i32
    %c0_i32_0 = arith.constant 0 : i32
    %c0_i32_1 = arith.constant 0 : i32
    return %c0_i32, %c0_i32_0 : i32, i32
  }
  func.func @transform_2(%arg0: i32) -> (i32, i32) {
    %c0_i32 = arith.constant 0 : i32
    %c0_i32_0 = arith.constant 0 : i32
    %c0_i32_1 = arith.constant 0 : i32
    return %c0_i32, %c0_i32_0 : i32, i32
  }
  func.func @transform_3(%arg0: i32) -> (i32, i32) {
    %c0_i32 = arith.constant 0 : i32
    %c0_i32_0 = arith.constant 0 : i32
    %c0_i32_1 = arith.constant 0 : i32
    return %c0_i32, %c0_i32_0 : i32, i32
  }
  func.func @transform_4(%arg0: i32) -> (i32, i32) {
    %c0_i32 = arith.constant 0 : i32
    %c0_i32_0 = arith.constant 0 : i32
    %c0_i32_1 = arith.constant 0 : i32
    return %c0_i32, %c0_i32_0 : i32, i32
  }
  func.func @transform_5(%arg0: i32) -> (i32, i32) {
    %c0_i32 = arith.constant 0 : i32
    %c0_i32_0 = arith.constant 0 : i32
    %c0_i32_1 = arith.constant 0 : i32
    return %c0_i32, %c0_i32_0 : i32, i32
  }
  func.func @transform_6(%arg0: i32) -> (i32, i32) {
    %c0_i32 = arith.constant 0 : i32
    %c0_i32_0 = arith.constant 0 : i32
    %c0_i32_1 = arith.constant 0 : i32
    return %c0_i32, %c0_i32_0 : i32, i32
  }
  func.func @transform_7(%arg0: i32) -> (i32, i32) {
    %c0_i32 = arith.constant 0 : i32
    %c0_i32_0 = arith.constant 0 : i32
    %c0_i32_1 = arith.constant 0 : i32
    return %c0_i32, %c0_i32_0 : i32, i32
  }
  func.func @transform_8(%arg0: i32) -> (i32, i32) {
    %c0_i32 = arith.constant 0 : i32
    %c0_i32_0 = arith.constant 0 : i32
    %c0_i32_1 = arith.constant 0 : i32
    return %c0_i32, %c0_i32_0 : i32, i32
  }
  func.func @transform_9(%arg0: i32) -> (i32, i32) {
    %c0_i32 = arith.constant 0 : i32
    %c0_i32_0 = arith.constant 0 : i32
    return %c0_i32, %arg0 : i32, i32
  }
  func.func @transform_10(%arg0: i32) -> (i32, i32) {
    %c0_i32 = arith.constant 0 : i32
    %c0_i32_0 = arith.constant 0 : i32
    return %c0_i32, %arg0 : i32, i32
  }
}

</mosaic_0001>

<bundles_post_ra>
// kernel: affine_half_flow_forward_fm.1
= control target key start
LH: loop header
LB: loop body
LE: loop exit
PB: predicated region body
PF: predicated region fallthrough
CT: control target
= control target key end

     0   :  { %s1804_s0 = inlined_call_operand.vmem [shape: f32[8,512], index: 0, kind: input, shape index: {}]   ;;  %s1805_s1 = inlined_call_operand.vmem [shape: f32[48,8], index: 1, kind: input, shape index: {}]   ;;  %s1806_s2 = inlined_call_operand.vmem [shape: f32[48,1], index: 2, kind: input, shape index: {}]   ;;  %s1807_s3 = inlined_call_operand.vmem [shape: f32[48,48], index: 3, kind: input, shape index: {}]   ;;  %s1808_s4 = inlined_call_operand.vmem [shape: f32[48,1], index: 4, kind: input, shape index: {}]   ;;  %s1809_s5 = inlined_call_operand.vmem [shape: f32[48,48], index: 5, kind: input, shape index: {}]   ;;  %s1810_s6 = inlined_call_operand.vmem [shape: f32[48,1], index: 6, kind: input, shape index: {}]   ;;  %s1811_s7 = inlined_call_operand.vmem [shape: f32[16,48], index: 7, kind: input, shape index: {}]   ;;  %s1812_s8 = inlined_call_operand.vmem [shape: f32[16,1], index: 8, kind: input, shape index: {}]   ;;  %s1813_s9 = inlined_call_operand.hbm [shape: f32[8,512], index: 9, kind: output, shape index: {0}]   ;;  %s1814_s10 = inlined_call_operand.hbm [shape: f32[1,512], index: 10, kind: output, shape index: {1}]  }
   0x1   :  { %1816 = sst [smem:[#allocation10_spill]] %s1804_s0 }
   0x2   :  { %16 = vsyncpa [#allocation3], 0 }
   0x3   :  { %18 = vsyncpa [#allocation3 + $0x1], 0 }
   0x4   :  { %19 = vsyncpa [#allocation5], 0 }
   0x5   :  { %21 = vsyncpa [#allocation5 + $0x1], 0  ;;  %s1490_s13 = smov 0   ;;  %s1492_s14 = smov 0  }
   0x6   :  { %s1494_s15 = smov 0   ;;  %s1496_s16 = smov 0  }
   0x7 LB: > { %1817 = sst [smem:[#allocation8_spill]] %s1424_s15  ;;  %s1511_s17 = sadd.s32 4294967295, %s1428_s16   ;;  %s1428_s16 = sphi %s1496_s16, %s1828_s16   ;;  %s1424_s15 = sphi %s1494_s15, %s1825_s15   ;;  %s1420_s14 = sphi %s1492_s14, %s1827_s14   ;;  %s1416_s13 = sphi %s1490_s13, %s1826_s13  }
   0x8   : > { %s1199_s18 = sadd.s32 4294967294, %s1428_s16   ;;  %s1515_s19 = sadd.s32 1, %s1428_s16  }
   0x9   : > { %s228_s20 = sadd.s32 1, %s1424_s15  ;;  %s225_s21 = ssub.s32 %s1428_s16, %s1515_s19 }
   0xa   : > { %p238_p0 = scmp.ne.s32.totalorder %s1424_s15, %s1420_s14  ;;  %p226_p1 = scmp.eq.s32.totalorder %s225_s21, 0 }
   0xb   : > { %p239_p2 = scmp.eq.s32.totalorder %s1511_s17, 1  ;;  %p244_p3 = scmp.ne.s32.totalorder %s1420_s14, %s1416_s13 }
   0xc   : > { %p245_p4 = scmp.eq.s32.totalorder %s1199_s18, 1  ;;  %p1202_p7 = scmp.ge.s32.totalorder %s1428_s16, 1 }
   0xd   : > { %s1526_s22 = scalar_select %p226_p1, %s1424_s15, %s228_s20  }
   0xe   : > { %p1528_p5 = por %p239_p2, %p238_p0  ;;  %p1532_p6 = por %p245_p4, %p244_p3 }
   0xf   : > { %1818 = sst [smem:[#allocation9_spill]] %s1526_s22  ;;  %p322_p8 = scmp.lt.s32.totalorder %s1428_s16, 3 }
  0x11   : > { %p323_p9 = pnand %p1202_p7, %p322_p8 }
  0x12   : > { %s1205_s25 = sshll.u32 (!%p323_p9), %s1511_s17, 1  ;;  %v1430_v0 = vmov (!%p323_p9), 0.0   ;;  %v1431_v1 = vmov (!%p323_p9), 0   ;;  %v381_v2 = vld [vmem:[%s1806_s2] sm:$0xff] (!%p323_p9)  ;;  %v383_v3 = vld [vmem:[%s1806_s2 + $0x10] sm:$0xff] (!%p323_p9)  ;;  %v382_v4 = vld [vmem:[%s1806_s2 + $0x8] sm:$0xff] (!%p323_p9) }
  0x13   : > { %326 = sbr.rel (%p323_p9) target bundleno = 1028 (0x404), region = 56  ;;  %p366_p10 = scmp.lt.s32.totalorder (!%p323_p9), %s1205_s25, 3  ;;  %500 = vmatprep.mubr.f32.mxu0 (!%p323_p9), %v1430_v0  ;;  %518 = vmatprep.mubr.f32.mxu1 (!%p323_p9), %v1430_v0  ;;  %v384_v5 = vld [vmem:[%s1806_s2 + $0x18] sm:$0xff] (!%p323_p9)  ;;  %v375_v6 = vld [vmem:[%s1805_s1] sm:$0xff] (!%p323_p9)  ;;  %vm417_vm0 = vcmask (!%p323_p9), 64512   ;;  %v386_v11 = vld [vmem:[%s1806_s2 + $0x28] sm:$0xff] (!%p323_p9) }
  0x14   : > { %1328 = vset.pattern.permute.xlu0 (!%p323_p9), %v1431_v1  ;;  %1329 = vset.pattern.permute.xlu1 (!%p323_p9), %v1431_v1  ;;  %s1821_s0 = sld [smem:[#allocation10_spill]] (!%p323_p9)  ;;  %v378_v9 = vld [vmem:[%s1805_s1 + $0x18] sm:$0xff] (!%p323_p9)  ;;  %v385_v10 = vld [vmem:[%s1806_s2 + $0x20] sm:$0xff] (!%p323_p9)  ;;  %v376_v12 = vld [vmem:[%s1805_s1 + $0x8] sm:$0xff] (!%p323_p9)  ;;  %vm603_vm1 = vcmask (!%p323_p9), 392192   ;;  %s1711_s30 = sand.u32 (!%p323_p9), 1, %s1420_s14  }
  0x15   : > { %389 = vperm.xlu0 (!%p323_p9), %1328, %v381_v2   ;;  %399 = vperm.xlu1 (!%p323_p9), %1329, %v383_v3   ;;  %v379_v13 = vld [vmem:[%s1805_s1 + $0x20] sm:$0xff] (!%p323_p9)  ;;  %v568_v15 = vld [vmem:[%s1808_s4 + $0x8] sm:$0xff] (!%p323_p9)  ;;  %v377_v16 = vld [vmem:[%s1805_s1 + $0x10] sm:$0xff] (!%p323_p9)  ;;  %s1203_s11 = sshll.u32 (!%p323_p9), %s1711_s30, 4  ;;  %s1204_s12 = sshll.u32 (!%p323_p9), %s1711_s30, 1 }
  0x16   : > { %v567_v14 = vld [vmem:[%s1808_s4] sm:$0xff] (!%p323_p9)  ;;  %v380_v17 = vld [vmem:[%s1805_s1 + $0x28] sm:$0xff] (!%p323_p9)  ;;  %v569_v18 = vld [vmem:[%s1808_s4 + $0x10] sm:$0xff] (!%p323_p9)  ;;  %s1235_s18 = sshll.u32 (!%p323_p9), %s1511_s17, 8  ;;  %s1236_s26 = sshll.u32 (!%p323_p9), %s1511_s17, 5 }
  0x17   : > { %v570_v19 = vld [vmem:[%s1808_s4 + $0x18] sm:$0xff] (!%p323_p9)  ;;  %v571_v20 = vld [vmem:[%s1808_s4 + $0x20] sm:$0xff] (!%p323_p9)  ;;  %v572_v21 = vld [vmem:[%s1808_s4 + $0x28] sm:$0xff] (!%p323_p9)  ;;  %s1725_s22 = scalar_lea.hbm (!%p323_p9), %s1813_s9, %s1235_s18  ;;  %s1433_s29 = smov (!%p323_p9), [#allocation2]  }
  0x18   : > { %v753_v22 = vld [vmem:[%s1810_s6] sm:$0xff] (!%p323_p9)  ;;  %v754_v23 = vld [vmem:[%s1810_s6 + $0x8] sm:$0xff] (!%p323_p9)  ;;  %v755_v24 = vld [vmem:[%s1810_s6 + $0x10] sm:$0xff] (!%p323_p9)  ;;  %s1338_s15 = sshll.u32 (!%p323_p9), %s1433_s29, 4  ;;  %s1339_s15 = int_to_ptr.vmem [resolvable:$false] %s1338_s15 }
  0x19   : > { %394 = vperm.xlu0 (!%p323_p9), %1328, %v382_v4   ;;  %404 = vperm.xlu1 (!%p323_p9), %1329, %v384_v5   ;;  %v756_v25 = vld [vmem:[%s1810_s6 + $0x18] sm:$0xff] (!%p323_p9)  ;;  %v757_v26 = vld [vmem:[%s1810_s6 + $0x20] sm:$0xff] (!%p323_p9)  ;;  %v758_v27 = vld [vmem:[%s1810_s6 + $0x28] sm:$0xff] (!%p323_p9) }
  0x1a   : > { %s1830_s25 = smov (!%p366_p10, %s1205_s25), 3  ;;  %v934_v28 = vld [vmem:[%s1812_s8] sm:$0xff]  ;;  %v935_v29 = vld [vmem:[%s1812_s8 + $0x8] sm:$0xff] }
  0x1b   : > { %s1206_s20 = sshll.u32 %s1830_s25, 3 }
  0x1c   : > { %s369_s27 = scalar_lea.vmem %s1821_s0, %s1206_s20  ;;  %s357_s20 = scalar_lea.vmem [#allocation2], %s1203_s11 }
  0x1d   : > { %v1559_v7 = vld [vmem:[%s369_s27 + $0x8] sm:$0xff]  ;;  %v1561_v8 = vld [vmem:[%s369_s27] sm:$0xff]  ;;  %409 = vperm.xlu0 %1328, %v385_v10   ;;  %414 = vperm.xlu1 %1329, %v386_v11   ;;  %s1094_s21 = sshll.u32 %s357_s20, 4  ;;  %s1719_s27 = scalar_lea.vmem [#allocation4], %s1204_s12  ;;  %s1727_s21 = int_to_ptr.vmem [resolvable:$true] %s1094_s21 }
  0x1e   : > { %436 = vmatprep.subr.mxu0 %v1559_v7  ;;  %1273 = vmatprep.subr.mxu1 %v1559_v7  ;;  %s1108_s28 = sshll.u32 %s1719_s27, 4  ;;  %s1736_s11 = scalar_lea.hbm %s1814_s10, %s1236_s26  ;;  %s1738_s28 = int_to_ptr.vmem [resolvable:$true] %s1108_s28 }
  0x1f   : > { %437 = vmatpush1.msra.mxu0 %v1561_v8  ;;  %1274 = vmatpush1.msra.mxu1 %v1561_v8  ;;  %s1075_s12 = scalar_lea.sflag [#allocation3], %s1711_s30  ;;  %s1334_s18 = scalar_lea.vmem %s1727_s21, 256 }
  0x20   : > { %1207 = vmatmul.mubr.msk.f32.vlgmr.msra.gmra.mrb[0].mxu0 %vm417_vm0, %v375_v6  ;;  %1210 = vmatmul.mubr.msk.f32.vlgmr.msra.gmra.mrb[0].mxu1 %vm417_vm0, %v378_v9  ;;  %p1335_p11 = scmp.ne.s32.totalorder %s1727_s21, %s1334_s18  ;;  %s1340_s0 = scalar_lea.vmem %s1339_s15, 512 }
  0x21   : > { %506 = vmatprep.mubr.f32.mxu0 %v1430_v0  ;;  %524 = vmatprep.mubr.f32.mxu1 %v1430_v0  ;;  %p1341_p0 = scmp.lt.s32.totalorder %s1727_s21, %s1339_s15  ;;  %p1342_p1 = scmp.lt.s32.totalorder %s1340_s0, %s1334_s18 }
  0x22   : > { %575 = vperm.xlu0 %1328, %v567_v14   ;;  %580 = vperm.xlu1 %1329, %v568_v15   ;;  %p1336_p12 = pnand %p1335_p11, %p1528_p5 }
  0x23   : > { %p1343_p2 = por %p1342_p1, %p1341_p0 }
  0x24   : > { %1208 = vmatmul.mubr.msk.f32.gmra.mrb[2].mxu0 %vm417_vm0, %v376_v12  ;;  %1211 = vmatmul.mubr.msk.f32.gmra.mrb[2].mxu1 %vm417_vm0, %v379_v13  ;;  %p1337_p13 = pneg %p1336_p12 }
  0x25   : > { %512 = vmatprep.mubr.f32.mxu0 %v1430_v0  ;;  %530 = vmatprep.mubr.f32.mxu1 %v1430_v0 }
  0x26   : > { %585 = vperm.xlu0 %1328, %v569_v18   ;;  %590 = vperm.xlu1 %1329, %v570_v19   ;;  %p1344_p3 = pnand %p1343_p2, %p1337_p13 }
  0x28   : > { %1209 = vmatmul.mubr.msk.f32.gmra.mrb[4].mxu0 %vm417_vm0, %v377_v16  ;;  %1212 = vmatmul.mubr.msk.f32.gmra.mrb[4].mxu1 %vm417_vm0, %v380_v17 }
  0x29   : > { %686 = vmatprep.mubr.f32.mxu1 %v1430_v0  ;;  %871 = vmatprep.mubr.f32.mxu0 %v1430_v0 }
  0x2a   : > { %595 = vperm.xlu0 %1328, %v571_v20   ;;  %600 = vperm.xlu1 %1329, %v572_v21  }
  0x2e   : > { %761 = vperm.xlu0 %1328, %v753_v22   ;;  %766 = vperm.xlu1 %1329, %v754_v23  }
  0x32   : > { %771 = vperm.xlu0 %1328, %v755_v24   ;;  %776 = vperm.xlu1 %1329, %v756_v25  }
  0x36   : > { %781 = vperm.xlu0 %1328, %v757_v26   ;;  %786 = vperm.xlu1 %1329, %v758_v27  }
  0x3a   : > { %938 = vperm.xlu0 %1328, %v934_v28   ;;  %943 = vperm.xlu1 %1329, %v935_v29   ;;  %v561_v29 = vld [vmem:[%s1807_s3] sm:$0xff] }
  0x94   : > { %v390_v30 = vpop.permute.xlu0 %389  ;;  %v400_v31 = vpop.permute.xlu1 %399 }
  0x98   : > { %v395_v32 = vpop.permute.xlu0 %394  ;;  %v405_v33 = vpop.permute.xlu1 %404 }
  0x9c   : > { %v410_v40 = vpop.permute.xlu0 %409  ;;  %v415_v53 = vpop.permute.xlu1 %414 }
  0xf3   : > { %v502_v34 = vpop.f32.mrb[0].mxu0  ;;  %v520_v35 = vpop.f32.mrb[0].mxu1 }
  0xf4   : > { %v503_v36 = vadd.f32 %v502_v34, %v390_v30  ;;  %v504_v37 = vpop.f32.mrb[1].mxu0  ;;  %v522_v38 = vpop.f32.mrb[1].mxu1  ;;  %v521_v41 = vadd.f32 %v520_v35, %v405_v33  ;;  %v566_v34 = vld [vmem:[%s1807_s3 + $0x28] sm:$0xff] }
  0xf5   : > { %v505_v39 = vadd.f32 %v504_v37, %v390_v30  ;;  %v523_v44 = vadd.f32 %v522_v38, %v405_v33  ;;  %v562_v30 = vld [vmem:[%s1807_s3 + $0x8] sm:$0xff]  ;;  %v565_v33 = vld [vmem:[%s1807_s3 + $0x20] sm:$0xff]  ;;  %v576_v35 = vpop.permute.xlu0 %575 }
  0xf6   : > { %v537_v42 = vmul.f32 0.01, %v503_v36  ;;  %v543_v54 = vmul.f32 0.01, %v521_v41 }
  0xf7   : > { %v538_v43 = vmul.f32 0.01, %v505_v39  ;;  %v508_v45 = vpop.f32.mrb[2].mxu0  ;;  %v526_v46 = vpop.f32.mrb[2].mxu1  ;;  %v544_v58 = vmul.f32 0.01, %v523_v44 }
  0xf8   : > { %v509_v47 = vadd.f32 %v508_v45, %v395_v32  ;;  %v527_v48 = vadd.f32 %v526_v46, %v410_v40  ;;  %v510_v49 = vpop.f32.mrb[3].mxu0  ;;  %v528_v50 = vpop.f32.mrb[3].mxu1  ;;  %v549_v56 = vmax.f32 %v503_v36, %v537_v42  ;;  %v555_v17 = vmax.f32 %v521_v41, %v543_v54 }
  0xf9   : > { %v511_v51 = vadd.f32 %v510_v49, %v395_v32  ;;  %v529_v52 = vadd.f32 %v528_v50, %v410_v40  ;;  %v550_v57 = vmax.f32 %v505_v39, %v538_v43  ;;  %v556_v21 = vmax.f32 %v523_v44, %v544_v58  ;;  %v564_v32 = vld [vmem:[%s1807_s3 + $0x18] sm:$0xff]  ;;  %v581_v40 = vpop.permute.xlu1 %580 }
  0xfa   : > { %v539_v55 = vmul.f32 0.01, %v509_v47  ;;  %v545_v63 = vmul.f32 0.01, %v527_v48 }
  0xfb   : > { %v540_v59 = vmul.f32 0.01, %v511_v51  ;;  %v514_v60 = vpop.f32.mrb[4].mxu0  ;;  %v532_v61 = vpop.f32.mrb[4].mxu1  ;;  %v546_v6 = vmul.f32 0.01, %v529_v52 }
  0xfc   : > { %v551_v62 = vmax.f32 %v509_v47, %v539_v55  ;;  %v515_v1 = vadd.f32 %v514_v60, %v400_v31  ;;  %v533_v2 = vadd.f32 %v532_v61, %v415_v53  ;;  %v516_v3 = vpop.f32.mrb[5].mxu0  ;;  %v534_v4 = vpop.f32.mrb[5].mxu1  ;;  %v557_v18 = vmax.f32 %v527_v48, %v545_v63 }
  0xfd   : > { %v552_v5 = vmax.f32 %v511_v51, %v540_v59  ;;  %v517_v9 = vadd.f32 %v516_v3, %v400_v31  ;;  %v535_v10 = vadd.f32 %v534_v4, %v415_v53  ;;  %v558_v22 = vmax.f32 %v529_v52, %v546_v6  ;;  %v563_v31 = vld [vmem:[%s1807_s3 + $0x10] sm:$0xff]  ;;  %v586_v48 = vpop.permute.xlu0 %585  ;;  %v591_v59 = vpop.permute.xlu1 %590 }
  0xfe   : > { %v1239_v11 = vpack.c.bf16 %v551_v62, %v549_v56  ;;  %v541_v12 = vmul.f32 0.01, %v515_v1  ;;  %v547_v13 = vmul.f32 0.01, %v533_v2 }
  0xff   : > { %v542_v14 = vmul.f32 0.01, %v517_v9  ;;  %v548_v15 = vmul.f32 0.01, %v535_v10  ;;  %v1237_v16 = vpack.c.bf16 %v552_v5, %v550_v57 }
 0x100   : > { %v553_v19 = vmax.f32 %v515_v1, %v541_v12  ;;  %v559_v20 = vmax.f32 %v533_v2, %v547_v13 }
 0x101   : > { %v554_v23 = vmax.f32 %v517_v9, %v542_v14  ;;  %v560_v24 = vmax.f32 %v535_v10, %v548_v15  ;;  %1238 = vmatprep.subr.bf16.mxu1 %v1237_v16  ;;  %v596_v5 = vpop.permute.xlu0 %595 }
 0x102   : > { %v1243_v25 = vpack.c.bf16 %v555_v17, %v553_v19  ;;  %v1247_v26 = vpack.c.bf16 %v559_v20, %v557_v18  ;;  %1240 = vmatpush1.bf16.msra.mxu1 %v1239_v11  ;;  %v601_v18 = vpop.permute.xlu1 %600 }
 0x103   : > { %v1241_v27 = vpack.c.bf16 %v556_v21, %v554_v23  ;;  %v1245_v28 = vpack.c.bf16 %v560_v24, %v558_v22 }
 0x105   : > { %1242 = vmatprep.subr.bf16.mxu1 %v1241_v27 }
 0x106   : > { %1244 = vmatpush1.bf16.msra.mxu1 %v1243_v25 }
 0x107   : > { %1246 = vmatprep.subr.bf16.mxu1 %v1245_v28 }
 0x10a   : > { %1248 = vmatpush1.bf16.msra.mxu1 %v1247_v26 }
 0x10d   : > { %1213 = vmatmul.mubr.msk.f32.vlgmr.msra.gmra.mrb[6].mxu1 %vm603_vm1, %v561_v29 }
 0x10e   : > { %692 = vmatprep.mubr.f32.mxu1 %v1430_v0 }
 0x111   : > { %1214 = vmatmul.mubr.msk.f32.gmra.mrb[8].mxu1 %vm603_vm1, %v562_v30 }
 0x112   : > { %698 = vmatprep.mubr.f32.mxu1 %v1430_v0 }
 0x115   : > { %1215 = vmatmul.mubr.msk.f32.gmra.mrb[10].mxu1 %vm603_vm1, %v563_v31 }
 0x116   : > { %704 = vmatprep.mubr.f32.mxu1 %v1430_v0 }
 0x119   : > { %1216 = vmatmul.mubr.msk.f32.gmra.mrb[12].mxu1 %vm603_vm1, %v564_v32 }
 0x11a   : > { %710 = vmatprep.mubr.f32.mxu1 %v1430_v0 }
 0x11d   : > { %1217 = vmatmul.mubr.msk.f32.gmra.mrb[14].mxu1 %vm603_vm1, %v565_v33 }
 0x11e   : > { %716 = vmatprep.mubr.f32.mxu1 %v1430_v0 }
 0x121   : > { %1218 = vmatmul.mubr.msk.f32.gmra.mrb[16].mxu1 %vm603_vm1, %v566_v34  ;;  %v747_v34 = vld [vmem:[%s1809_s5] sm:$0xff] }
 0x122   : > { %1022 = vmatprep.mubr.f32.mxu1 %v1430_v0 }
 0x1e0   : > { %v688_v36 = vpop.f32.mrb[6].mxu1 }
 0x1e1   : > { %v689_v37 = vadd.f32 %v688_v36, %v576_v35  ;;  %v690_v38 = vpop.f32.mrb[7].mxu1  ;;  %v749_v36 = vld [vmem:[%s1809_s5 + $0x10] sm:$0xff] }
 0x1e2   : > { %v691_v39 = vadd.f32 %v690_v38, %v576_v35  ;;  %v748_v35 = vld [vmem:[%s1809_s5 + $0x8] sm:$0xff]  ;;  %v751_v38 = vld [vmem:[%s1809_s5 + $0x20] sm:$0xff] }
 0x1e3   : > { %v723_v42 = vmul.f32 0.01, %v689_v37 }
 0x1e4   : > { %v694_v41 = vpop.f32.mrb[8].mxu1  ;;  %v724_v45 = vmul.f32 0.01, %v691_v39 }
 0x1e5   : > { %v695_v43 = vadd.f32 %v694_v41, %v581_v40  ;;  %v696_v44 = vpop.f32.mrb[9].mxu1  ;;  %v735_v51 = vmax.f32 %v689_v37, %v723_v42  ;;  %v750_v37 = vld [vmem:[%s1809_s5 + $0x18] sm:$0xff] }
 0x1e6   : > { %v697_v46 = vadd.f32 %v696_v44, %v581_v40  ;;  %v736_v55 = vmax.f32 %v691_v39, %v724_v45  ;;  %v752_v39 = vld [vmem:[%s1809_s5 + $0x28] sm:$0xff]  ;;  %v762_v40 = vpop.permute.xlu0 %761  ;;  %v767_v45 = vpop.permute.xlu1 %766 }
 0x1e7   : > { %v725_v47 = vmul.f32 0.01, %v695_v43 }
 0x1e8   : > { %v726_v49 = vmul.f32 0.01, %v697_v46  ;;  %v700_v50 = vpop.f32.mrb[10].mxu1 }
 0x1e9   : > { %v737_v52 = vmax.f32 %v695_v43, %v725_v47  ;;  %v701_v53 = vadd.f32 %v700_v50, %v586_v48  ;;  %v702_v54 = vpop.f32.mrb[11].mxu1 }
 0x1ea   : > { %v738_v56 = vmax.f32 %v697_v46, %v726_v49  ;;  %v703_v57 = vadd.f32 %v702_v54, %v586_v48 }
 0x1eb   : > { %v1251_v58 = vpack.c.bf16 %v737_v52, %v735_v51  ;;  %v727_v62 = vmul.f32 0.01, %v701_v53 }
 0x1ec   : > { %v706_v60 = vpop.f32.mrb[12].mxu1  ;;  %v1249_v61 = vpack.c.bf16 %v738_v56, %v736_v55  ;;  %v728_v2 = vmul.f32 0.01, %v703_v57 }
 0x1ed   : > { %v707_v63 = vadd.f32 %v706_v60, %v591_v59  ;;  %v708_v1 = vpop.f32.mrb[13].mxu1  ;;  %v739_v10 = vmax.f32 %v701_v53, %v727_v62  ;;  %v772_v53 = vpop.permute.xlu0 %771 }
 0x1ee   : > { %v709_v3 = vadd.f32 %v708_v1, %v591_v59  ;;  %1250 = vmatprep.subr.bf16.mxu0 %v1249_v61  ;;  %v740_v14 = vmax.f32 %v703_v57, %v728_v2 }
 0x1ef   : > { %v729_v4 = vmul.f32 0.01, %v707_v63  ;;  %1252 = vmatpush1.bf16.msra.mxu0 %v1251_v58 }
 0x1f0   : > { %v730_v6 = vmul.f32 0.01, %v709_v3  ;;  %v712_v9 = vpop.f32.mrb[14].mxu1 }
 0x1f1   : > { %v741_v11 = vmax.f32 %v707_v63, %v729_v4  ;;  %v713_v12 = vadd.f32 %v712_v9, %v596_v5  ;;  %v714_v13 = vpop.f32.mrb[15].mxu1  ;;  %v777_v63 = vpop.permute.xlu1 %776 }
 0x1f2   : > { %v742_v15 = vmax.f32 %v709_v3, %v730_v6  ;;  %v715_v16 = vadd.f32 %v714_v13, %v596_v5 }
 0x1f3   : > { %v1255_v17 = vpack.c.bf16 %v741_v11, %v739_v10  ;;  %v731_v21 = vmul.f32 0.01, %v713_v12  ;;  %v782_v11 = vpop.permute.xlu0 %781 }
 0x1f4   : > { %v718_v19 = vpop.f32.mrb[16].mxu1  ;;  %v1253_v20 = vpack.c.bf16 %v742_v15, %v740_v14  ;;  %v732_v24 = vmul.f32 0.01, %v715_v16 }
 0x1f5   : > { %v719_v22 = vadd.f32 %v718_v19, %v601_v18  ;;  %v720_v23 = vpop.f32.mrb[17].mxu1  ;;  %v743_v28 = vmax.f32 %v713_v12, %v731_v21 }
 0x1f6   : > { %v721_v25 = vadd.f32 %v720_v23, %v601_v18  ;;  %1254 = vmatprep.subr.bf16.mxu0 %v1253_v20  ;;  %v744_v30 = vmax.f32 %v715_v16, %v732_v24 }
 0x1f7   : > { %v733_v26 = vmul.f32 0.01, %v719_v22  ;;  %1256 = vmatpush1.bf16.msra.mxu0 %v1255_v17 }
 0x1f8   : > { %v734_v27 = vmul.f32 0.01, %v721_v25 }
 0x1f9   : > { %v745_v29 = vmax.f32 %v719_v22, %v733_v26  ;;  %v787_v22 = vpop.permute.xlu1 %786 }
 0x1fa   : > { %v746_v31 = vmax.f32 %v721_v25, %v734_v27 }
 0x1fb   : > { %v1259_v32 = vpack.c.bf16 %v745_v29, %v743_v28 }
 0x1fc   : > { %v1257_v33 = vpack.c.bf16 %v746_v31, %v744_v30 }
 0x1fe   : > { %1258 = vmatprep.subr.bf16.mxu0 %v1257_v33 }
 0x1ff   : > { %1260 = vmatpush1.bf16.msra.mxu0 %v1259_v32 }
 0x202   : > { %1219 = vmatmul.mubr.msk.f32.vlgmr.msra.gmra.mrb[6].mxu0 %vm603_vm1, %v747_v34 }
 0x203   : > { %877 = vmatprep.mubr.f32.mxu0 %v1430_v0 }
 0x206   : > { %1220 = vmatmul.mubr.msk.f32.gmra.mrb[8].mxu0 %vm603_vm1, %v748_v35 }
 0x207   : > { %883 = vmatprep.mubr.f32.mxu0 %v1430_v0 }
 0x20a   : > { %1221 = vmatmul.mubr.msk.f32.gmra.mrb[10].mxu0 %vm603_vm1, %v749_v36 }
 0x20b   : > { %889 = vmatprep.mubr.f32.mxu0 %v1430_v0 }
 0x20e   : > { %1222 = vmatmul.mubr.msk.f32.gmra.mrb[12].mxu0 %vm603_vm1, %v750_v37 }
 0x20f   : > { %895 = vmatprep.mubr.f32.mxu0 %v1430_v0 }
 0x212   : > { %1223 = vmatmul.mubr.msk.f32.gmra.mrb[14].mxu0 %vm603_vm1, %v751_v38  ;;  %v932_v38 = vld [vmem:[%s1811_s7] sm:$0xff] }
 0x213   : > { %901 = vmatprep.mubr.f32.mxu0 %v1430_v0 }
 0x216   : > { %1224 = vmatmul.mubr.msk.f32.gmra.mrb[16].mxu0 %vm603_vm1, %v752_v39  ;;  %v933_v39 = vld [vmem:[%s1811_s7 + $0x8] sm:$0xff] }
 0x217   : > { %1016 = vmatprep.mubr.f32.mxu0 %v1430_v0 }
 0x2d5   : > { %v873_v41 = vpop.f32.mrb[6].mxu0 }
 0x2d6   : > { %v874_v42 = vadd.f32 %v873_v41, %v762_v40  ;;  %v875_v43 = vpop.f32.mrb[7].mxu0 }
 0x2d7   : > { %v876_v44 = vadd.f32 %v875_v43, %v762_v40  ;;  %v939_v40 = vpop.permute.xlu0 %938 }
 0x2d8   : > { %v908_v47 = vmul.f32 0.01, %v874_v42 }
 0x2d9   : > { %v879_v46 = vpop.f32.mrb[8].mxu0  ;;  %v909_v50 = vmul.f32 0.01, %v876_v44 }
 0x2da   : > { %v880_v48 = vadd.f32 %v879_v46, %v767_v45  ;;  %v881_v49 = vpop.f32.mrb[9].mxu0  ;;  %v920_v56 = vmax.f32 %v874_v42, %v908_v47 }
 0x2db   : > { %v882_v51 = vadd.f32 %v881_v49, %v767_v45  ;;  %v921_v59 = vmax.f32 %v876_v44, %v909_v50 }
 0x2dc   : > { %v910_v52 = vmul.f32 0.01, %v880_v48 }
 0x2dd   : > { %v911_v54 = vmul.f32 0.01, %v882_v51  ;;  %v885_v55 = vpop.f32.mrb[10].mxu0 }
 0x2de   : > { %v922_v57 = vmax.f32 %v880_v48, %v910_v52  ;;  %v886_v58 = vadd.f32 %v885_v55, %v772_v53  ;;  %v887_v0 = vpop.f32.mrb[11].mxu0  ;;  %v1057_v55 = vlaneseq }
 0x2df   : > { %v923_v60 = vmax.f32 %v882_v51, %v911_v54  ;;  %v888_v61 = vadd.f32 %v887_v0, %v772_v53  ;;  %v1432_v53 = vmov 1966171168  }
 0x2e0   : > { %v1263_v62 = vpack.c.bf16 %v922_v57, %v920_v56  ;;  %v912_v3 = vmul.f32 0.01, %v886_v58  ;;  %v1055_v54 = vunpack.c.l.s4 %v1432_v53  ;;  %vm1729_vm2 = vcmp.lt.s32.totalorder %v1057_v55, 256 }
 0x2e1   : > { %v891_v1 = vpop.f32.mrb[12].mxu0  ;;  %v1261_v2 = vpack.c.bf16 %v923_v60, %v921_v59  ;;  %v913_v6 = vmul.f32 0.01, %v888_v61  ;;  %v1058_v60 = vshrl.u32 %v1057_v55, 7 }
 0x2e2   : > { %v892_v4 = vadd.f32 %v891_v1, %v777_v63  ;;  %v893_v5 = vpop.f32.mrb[13].mxu0  ;;  %v924_v14 = vmax.f32 %v886_v58, %v912_v3  ;;  %v1056_v59 = vunpack.c.0.s8 %v1055_v54 }
 0x2e3   : > { %v894_v9 = vadd.f32 %v893_v5, %v777_v63  ;;  %1262 = vmatprep.subr.bf16.mxu0 %v1261_v2  ;;  %1275 = vmatprep.subr.bf16.mxu1 %v1261_v2  ;;  %v925_v18 = vmax.f32 %v888_v61, %v913_v6 }
 0x2e4   : > { %v914_v10 = vmul.f32 0.01, %v892_v4  ;;  %1264 = vmatpush1.bf16.msra.mxu0 %v1263_v62  ;;  %1278 = vmatpush1.bf16.msra.mxu1 %v1263_v62  ;;  %v1059_v2 = vsub.s32 %v1056_v59, %v1058_v60 }
 0x2e5   : > { %v915_v12 = vmul.f32 0.01, %v894_v9  ;;  %v897_v13 = vpop.f32.mrb[14].mxu0 }
 0x2e6   : > { %v926_v15 = vmax.f32 %v892_v4, %v914_v10  ;;  %v898_v16 = vadd.f32 %v897_v13, %v782_v11  ;;  %v899_v17 = vpop.f32.mrb[15].mxu0  ;;  %v944_v4 = vpop.permute.xlu1 %943 }
 0x2e7   : > { %v927_v19 = vmax.f32 %v894_v9, %v915_v12  ;;  %v900_v20 = vadd.f32 %v899_v17, %v782_v11 }
 0x2e8   : > { %v1267_v21 = vpack.c.bf16 %v926_v15, %v924_v14  ;;  %v916_v25 = vmul.f32 0.01, %v898_v16 }
 0x2e9   : > { %v903_v23 = vpop.f32.mrb[16].mxu0  ;;  %v1265_v24 = vpack.c.bf16 %v927_v19, %v925_v18  ;;  %v917_v28 = vmul.f32 0.01, %v900_v20 }
 0x2ea   : > { %v904_v26 = vadd.f32 %v903_v23, %v787_v22  ;;  %v905_v27 = vpop.f32.mrb[17].mxu0  ;;  %v928_v32 = vmax.f32 %v898_v16, %v916_v25 }
 0x2eb   : > { %v906_v29 = vadd.f32 %v905_v27, %v787_v22  ;;  %1266 = vmatprep.subr.bf16.mxu0 %v1265_v24  ;;  %1276 = vmatprep.subr.bf16.mxu1 %v1265_v24  ;;  %v929_v34 = vmax.f32 %v900_v20, %v917_v28 }
 0x2ec   : > { %v918_v30 = vmul.f32 0.01, %v904_v26  ;;  %1268 = vmatpush1.bf16.msra.mxu0 %v1267_v21  ;;  %1279 = vmatpush1.bf16.msra.mxu1 %v1267_v21 }
 0x2ed   : > { %v919_v31 = vmul.f32 0.01, %v906_v29 }
 0x2ee   : > { %v930_v33 = vmax.f32 %v904_v26, %v918_v30 }
 0x2ef   : > { %v931_v35 = vmax.f32 %v906_v29, %v919_v31 }
 0x2f0   : > { %v1271_v36 = vpack.c.bf16 %v930_v33, %v928_v32 }
 0x2f1   : > { %v1269_v37 = vpack.c.bf16 %v931_v35, %v929_v34 }
 0x2f3   : > { %1270 = vmatprep.subr.bf16.mxu0 %v1269_v37  ;;  %1277 = vmatprep.subr.bf16.mxu1 %v1269_v37 }
 0x2f4   : > { %1272 = vmatpush1.bf16.msra.mxu0 %v1271_v36  ;;  %1280 = vmatpush1.bf16.msra.mxu1 %v1271_v36 }
 0x2f7   : > { %1225 = vmatmul.mubr.msk.f32.vlgmr.msra.gmra.mrb[18].mxu0 %vm603_vm1, %v932_v38  ;;  %1226 = vmatmul.mubr.msk.f32.vlgmr.msra.gmra.mrb[18].mxu1 %vm603_vm1, %v933_v39 }
 0x3ca   : > { %v1018_v41 = vpop.f32.mrb[18].mxu0  ;;  %v1024_v42 = vpop.f32.mrb[18].mxu1 }
 0x3cb   : > { %v1019_v43 = vadd.f32 %v1018_v41, %v939_v40  ;;  %v1020_v44 = vpop.f32.mrb[19].mxu0  ;;  %v1026_v45 = vpop.f32.mrb[19].mxu1  ;;  %v1025_v6 = vadd.f32 %v1024_v42, %v944_v4 }
 0x3cc   : > { %v1021_v46 = vadd.f32 %v1020_v44, %v939_v40  ;;  %v1027_v11 = vadd.f32 %v1026_v45, %v944_v4 }
 0x3cd   : > { %v1029_v47 = vmul.f32 1.442695, %v1019_v43  ;;  %v1039_v48 = vrot.slane %v1019_v43, 4 }
 0x3ce   : > { %v1031_v49 = vmul.f32 1.442695, %v1021_v46  ;;  %v1045_v50 = vrot.slane %v1021_v46, 4 }
 0x3cf   : > { %1330 = vpow2.f32 %v1029_v47  ;;  %v1040_v51 = vadd.f32 %v1039_v48, %v1019_v43 }
 0x3d0   : > { %1332 = vpow2.f32 %v1031_v49  ;;  %v1046_v52 = vadd.f32 %v1045_v50, %v1021_v46 }
 0x3d1   : > { %v1041_v56 = vrot.slane %v1040_v51, 2 }
 0x3d2   : > { %v1047_v57 = vrot.slane %v1046_v52, 2 }
 0x3d3   : > { %v1042_v58 = vadd.f32 %v1041_v56, %v1040_v51 }
 0x3d4   : > { %v1048_v0 = vadd.f32 %v1047_v57, %v1046_v52 }
 0x3d5   : > { %v1043_v61 = vrot.slane %v1042_v58, 1 }
 0x3d6   : > { %v1049_v62 = vrot.slane %v1048_v0, 1 }
 0x3d7   : > { %v1044_v63 = vadd.f32 %v1043_v61, %v1042_v58 }
 0x3d8   : > { %v1050_v1 = vadd.f32 %v1049_v62, %v1048_v0 }
 0x3d9   : > { %v1331_v3 = vpop.eup %1330 }
 0x3da   : > { %v1333_v5 = vpop.eup %1332  ;;  %v1033_v9 = vmul.f32 %v1331_v3, %v1561_v8  ;;  %v1053_v10 = vcombine.low %v1044_v63, %v1050_v1 }
 0x3db   : > { %v1034_v12 = vmul.f32 %v1333_v5, %v1559_v7 }
 0x3dc   : > { %v1035_v13 = vadd.f32 %v1033_v9, %v1025_v6  ;;  %v1060_v8 = vrot.slane %v1053_v10, %v1059_v2 }
 0x3dd   : > { %v1036_v14 = vadd.f32 %v1034_v12, %v1027_v11 }
 0x3de   : > { %1037 = vst [vmem:[%s357_s20] sm:$0xff] %v1035_v13  ;;  %v1067_v15 = vrot.slane %v1060_v8, %v1059_v2 }
 0x3df   : > { %1038 = vst [vmem:[%s357_s20 + $0x8] sm:$0xff] %v1036_v14 }
 0x3e0   : > { %1347 = shalt.err (!%p1344_p3)
}
 0x3e1   : > { %s1348_s20 = scalar_lea.hbm %s1725_s22, 256  ;;  %s1352_s25 = scalar_lea.hbm %s1813_s9, 512 }
 0x3e2   : > { %p1349_p4 = scmp.ne.s32.totalorder %s1725_s22, %s1348_s20  ;;  %p1353_p9 = scmp.lt.u32.totalorder %s1725_s22, %s1813_s9 }
 0x3e3   : > { %p1354_p10 = scmp.lt.u32.totalorder %s1352_s25, %s1348_s20  ;;  %p1356_p12 = scmp.lt.u32.totalorder %s1348_s20, %s1725_s22 }
 0x3e4   : > { %p1350_p7 = pnand %p1349_p4, %p1528_p5 }
 0x3e5   : > { %p1355_p11 = por %p1354_p10, %p1353_p9 }
 0x3e6   : > { %p1351_p8 = pneg %p1350_p7 }
 0x3e7   : > { %p1357_p13 = por %p1356_p12, %p1355_p11 }
 0x3e9   : > { %p1358_p0 = pnand %p1357_p13, %p1351_p8 }
 0x3eb   : > { %1361 = shalt.err (!%p1358_p0)
}
 0x3ec   : > { %1281 = dma.vmem_to_hbm [thread:$0]  (%p1528_p5), %s1727_s21, 256, %s1725_s22, %s1075_s12   ;;  %1073 = vst.msk [vmem:[%s1719_s27] sm:$0x3] %vm1729_vm2, %v1067_v15 }
 0x3ed   : > { %s1080_s0 = scalar_lea.sflag [#allocation5], %s1711_s30  ;;  %s1362_s18 = scalar_lea.vmem %s1738_s28, 32 }
 0x3ee   : > { %p1363_p1 = scmp.ne.s32.totalorder %s1738_s28, %s1362_s18  ;;  %s1434_s20 = smov [#allocation4]  }
 0x3ef   : > { %s1366_s26 = sshll.u32 %s1434_s20, 4  ;;  %s1367_s26 = int_to_ptr.vmem [resolvable:$false] %s1366_s26 }
 0x3f0   : > { %p1364_p2 = pnand %p1363_p1, %p1528_p5  ;;  %s1368_s17 = scalar_lea.vmem %s1367_s26, 64 }
 0x3f1   : > { %p1369_p4 = scmp.lt.s32.totalorder %s1738_s28, %s1367_s26  ;;  %p1370_p7 = scmp.lt.s32.totalorder %s1368_s17, %s1362_s18 }
 0x3f2   : > { %p1365_p3 = pneg %p1364_p2 }
 0x3f3   : > { %p1371_p8 = por %p1370_p7, %p1369_p4 }
 0x3f5   : > { %p1372_p9 = pnand %p1371_p8, %p1365_p3 }
 0x3f7   : > { %1375 = shalt.err (!%p1372_p9)
}
 0x3f8   : > { %s1376_s30 = scalar_lea.hbm %s1736_s11, 32  ;;  %s1380_s22 = scalar_lea.hbm %s1814_s10, 64 }
 0x3f9   : > { %p1377_p10 = scmp.ne.s32.totalorder %s1736_s11, %s1376_s30  ;;  %p1381_p13 = scmp.lt.u32.totalorder %s1736_s11, %s1814_s10 }
 0x3fa   : > { %p1382_p0 = scmp.lt.u32.totalorder %s1380_s22, %s1376_s30  ;;  %p1384_p2 = scmp.lt.u32.totalorder %s1376_s30, %s1736_s11 }
 0x3fb   : > { %p1378_p11 = pnand %p1377_p10, %p1528_p5 }
 0x3fc   : > { %p1383_p1 = por %p1382_p0, %p1381_p13 }
 0x3fd   : > { %p1379_p12 = pneg %p1378_p11 }
 0x3fe   : > { %p1385_p3 = por %p1384_p2, %p1383_p1 }
 0x400   : > { %p1386_p4 = pnand %p1385_p3, %p1379_p12 }
 0x402   : > { %1389 = shalt.err (!%p1386_p4)
}
 0x403   : > { %1282 = dma.vmem_to_hbm [thread:$0]  (%p1528_p5), %s1738_s28, 32, %s1736_s11, %s1080_s0  }
 0x404 PF: > { %p1292_p7 = scmp.ge.s32.totalorder %s1428_s16, 2  ;;  %s1120_s29 = sand.u32 1, %s1416_s13  }
 0x405   : > { %s1121_s15 = scalar_lea.sflag [#allocation3], %s1120_s29 }
 0x406   : > { %p1286_p8 = pnand %p1292_p7, %p1532_p6 }
 0x408   : > { %1407 = dma.done.wait (!%p1286_p8), %s1121_s15, 256  }
 0x409   : > { %1409 = vsyncadd (!%p1286_p8), %s1121_s15, 4294967040  ;;  %s1130_s18 = scalar_lea.sflag [#allocation5], %s1120_s29 }
 0x40a   : > { %1411 = dma.done.wait (!%p1286_p8), %s1130_s18, 32  }
 0x40b   : > { %1413 = vsyncadd (!%p1286_p8), %s1130_s18, 4294967264  ;;  %s1824_s23 = sld [smem:[#allocation8_spill]]  ;;  %s1825_s15 = sld [smem:[#allocation9_spill]] }
 0x40c   : > { %p24_p5 = scmp.ge.s32.totalorder %s1515_s19, 4   ;;  %s1826_s13 = smov %s1420_s14 }
 0x40d   : > { %s1828_s16 = smov %s1515_s19 }
 0x40e   :  { %26 = sbr.rel (!%p24_p5) target bundleno = 7 (0x7), region = 108 }
 0x411   : > { %s1827_s14 = smov %s1824_s23 }
 0x415   :  { %1135 = vsyncpa [#allocation3], 1 }
 0x416   :  { %1137 = vsyncpa [#allocation3 + $0x1], 1 }
 0x417   :  { %1138 = vsyncpa [#allocation5], 1 }
 0x418   :  { %1140 = vsyncpa [#allocation5 + $0x1], 1 }

</bundles_post_ra>
